<compile_context>
chip_gen: v7x
topology: tpu7x:2x2x1
jax: 0.10.0
libtpu: 0.0.40
codegen_flags: <defaults>
</compile_context>

<pallas_src>
import numpy as np
import jax
import jax.numpy as jnp
from jax.experimental import pallas as pl
from jax.experimental.pallas import tpu as pltpu


def _pick_ta(n):
    """A-tile edge; multiples of 256 feed the 256x256 MXU on v6e/v7x cleanly."""
    if n >= 2048:
        return 1024
    if n >= 1024:
        return 512
    if n >= 512:
        return 256
    return 128


def _pick_tb(batch):
    """Batch rows per MXU pass; keeps nb >= 2 for megacore on small batches."""
    if batch >= 1024:
        return 512
    if batch >= 512:
        return 256
    return 128


def _make_energy_kernel(ta):
    def energy_kernel(jof_ref, kof_ref, st_ref, at_ref, e_ref):
        """One upper-triangular tile (k, j) of E(s) = s^T A s per batch block.

        jof_ref/kof_ref: (nt,) int32 SMEM  col/row block ids of flattened tile t
        st_ref: (N_pad, TB) bf16   resident transposed state slab (feat x batch)
        at_ref: (TA, TA)   bf16    A^T tile  ( = A[k-block, j-block]^T )
        e_ref : (1, 1, TB) f32     lane-dense energy accumulator (output-resident)
        """
        t = pl.program_id(1)

        @pl.when(t == 0)
        def _init():
            e_ref[...] = jnp.zeros_like(e_ref)

        j = jof_ref[t]
        k = kof_ref[t]
        k_off = pl.multiple_of(k * ta, ta)
        j_off = pl.multiple_of(j * ta, ta)
        s_k = st_ref[pl.ds(k_off, ta), :]              # (TA, TB) bf16
        s_j = st_ref[pl.ds(j_off, ta), :]              # (TA, TB) bf16

        # (A_kj)^T @ s_k^T on the MXU with f32 accumulation.
        sa_t = jnp.dot(at_ref[...], s_k, preferred_element_type=jnp.float32)
        # Per-batch-column reduce over the j-block features: sublane reduce
        # (XLU slot, otherwise idle) straight into the lane-dense accumulator.
        e_ref[0] += jnp.sum(sa_t * s_j.astype(jnp.float32),
                            axis=0, keepdims=True)

    return energy_kernel


def prepare_matrix_for_kernel(A):
    """One-time (cacheable) prep of the coupling matrix: transpose + zero-pad
    to tile multiples + bf16 cast.  A is a model parameter -- hoist this out
    of the per-batch path (it would otherwise rival the kernel's A traffic).
    bf16 is exact for binary states; energies match the bf16-quantised matrix.
    """
    n = A.shape[0]
    ta = _pick_ta(n)
    n_pad = pl.cdiv(n, ta) * ta
    at = jnp.pad(jnp.asarray(A, jnp.float32).T.astype(jnp.bfloat16),
                 ((0, n_pad - n), (0, n_pad - n)))
    return at


def ebm_energy(visible, hidden, at_padded):
    """Batched BINARY-vartype energy E(v, h) = s^T A s with s = [v, h]."""
    b_sz, v_sz = visible.shape
    h_sz = hidden.shape[1]
    n = v_sz + h_sz
    ta = _pick_ta(n)
    n_pad = pl.cdiv(n, ta) * ta
    assert at_padded.shape == (n_pad, n_pad), "use prepare_matrix_for_kernel(A)"

    tb = _pick_tb(b_sz)
    b_pad = pl.cdiv(b_sz, tb) * tb
    nb = b_pad // tb
    nj = n_pad // ta
    nt = nj * (nj + 1) // 2

    # Flattened schedule over upper-triangular tiles only (row k <= col j):
    # below-diagonal tiles never pay a pipeline step.
    kk, jj = np.triu_indices(nj)
    jof = jnp.asarray(jj, jnp.int32)
    kof = jnp.asarray(kk, jnp.int32)

    # Transposed state slab (features x batch): bf16 is exact for binary
    # states; batch-on-lanes makes the per-step reduce land lane-dense.
    # TODO(synk): accept a pre-packed (N, B) bf16 slab to skip the per-call
    #             concat/transpose/pad for very large batches.
    s = jnp.concatenate([visible, hidden], axis=-1).astype(jnp.bfloat16)
    s_t = jnp.pad(s.T, ((0, n_pad - n), (0, b_pad - b_sz)))

    cost = pl.CostEstimate(
        flops=int(nb * nt * (2 * ta * ta * tb + 3 * ta * tb)),
        transcendentals=0,
        bytes_accessed=int(nb * nt * ta * ta * 2       # A^T tiles (bf16)
                           + nb * n_pad * tb * 2       # state slab, once/block
                           + nb * tb * 4))             # energies

    # TODO(synk): for N_pad >~ 8K with TB=512 the double-buffered state slab
    #             approaches v7x's 32 MiB scoped VMEM; tile the slab there.
    out = pl.pallas_call(
        _make_energy_kernel(ta),
        out_shape=jax.ShapeDtypeStruct((nb, 1, tb), jnp.float32),
        grid_spec=pltpu.PrefetchScalarGridSpec(
            num_scalar_prefetch=2,
            grid=(nb, nt),
            in_specs=[
                # Whole transposed state slab for this batch block; index is
                # constant over t, so it is DMA'd exactly once per batch block.
                pl.BlockSpec((n_pad, tb), lambda b, t, jof, kof: (0, b)),
                # A^T tile for upper-triangular tile t (active tiles only).
                pl.BlockSpec((ta, ta), lambda b, t, jof, kof: (jof[t], kof[t])),
            ],
            out_specs=pl.BlockSpec((1, 1, tb), lambda b, t, jof, kof: (b, 0, 0)),
        ),
        compiler_params=pltpu.CompilerParams(
            dimension_semantics=("parallel", "arbitrary"),
            vmem_limit_bytes=32 * 1024 * 1024,
        ),
        cost_estimate=cost,
    )(jof, kof, s_t, at_padded)

    # (nb, 1, TB) lane-dense slabs -> batch-ordered [B, 1]
    return out.reshape(-1)[:b_sz, None]


def build_matrix(b, c, W, vv, hh, V, H):
    """Plain-JAX glue reproducing EnergyBasedModel.matrix exactly."""
    A = jnp.diag(jnp.concatenate([b, c]))          # (V+H, V+H), diag = biases
    A = A.at[:V, V:].set(W.T)                      # visible-hidden couplings
    if vv is not None:
        vi, vj = np.triu_indices(V, 1)
        A = A.at[vi, vj].set(vv)                   # visible-visible couplings
    if hh is not None:
        hi, hj = np.triu_indices(H, 1)
        A = A.at[V + hi, V + hj].set(hh)           # hidden-hidden couplings
    return A.astype(jnp.float32)


if __name__ == "__main__":
    # Small but tiling-exercising sizes: N = 256 -> 2x2 A blocks (3 active
    # upper-triangular tiles), B = 200 -> 2 batch blocks of 128.
    V, H, B = 96, 160, 200
    N = V + H

    key = jax.random.PRNGKey(0)
    kb, kc, kW, kvv, khh, kv, kh = jax.random.split(key, 7)

    b = 0.1 * jax.random.normal(kb, (V,), jnp.float32)            # visible bias
    c = 0.1 * jax.random.normal(kc, (H,), jnp.float32)            # hidden bias
    W = 0.1 * jax.random.normal(kW, (H, V), jnp.float32)          # vis-hid weights
    vv = 0.05 * jax.random.normal(kvv, (V * (V - 1) // 2,), jnp.float32)
    hh = 0.05 * jax.random.normal(khh, (H * (H - 1) // 2,), jnp.float32)

    A = build_matrix(b, c, W, vv, hh, V, H)
    At_padded = prepare_matrix_for_kernel(A)        # cacheable model-param prep

    # Binary (dimod.BINARY vartype) visible / hidden states.
    visible = jax.random.bernoulli(kv, 0.5, (B, V)).astype(jnp.float32)
    hidden = jax.random.bernoulli(kh, 0.5, (B, H)).astype(jnp.float32)

    energies = jax.block_until_ready(ebm_energy(visible, hidden, At_padded))
    assert energies.shape == (B, 1)

    # Reference: float64 quadratic form of the bf16-quantised matrix (kernel
    # stores A in bf16; binary states and f32 accumulation are exact).
    A_q = np.asarray(A.astype(jnp.bfloat16).astype(jnp.float32), dtype=np.float64)
    s_np = np.concatenate([np.asarray(visible), np.asarray(hidden)],
                          axis=1).astype(np.float64)
    ref = np.einsum("bi,ij,bj->b", s_np, A_q, s_np)[:, None]
    np.testing.assert_allclose(np.asarray(energies), ref, rtol=2e-4, atol=2e-3)

    print("KERNEL_OK")
</pallas_src>

<mosaic_0001>
module attributes {stable_mosaic.version = 11 : i64} {
  func.func @energy_kernel(%arg0: i32, %arg1: i32, %arg2: memref<3xi32, #tpu.memory_space<smem>>, %arg3: memref<3xi32, #tpu.memory_space<smem>>, %arg4: memref<256x128xbf16, #tpu.memory_space<vmem>>, %arg5: memref<128x128xbf16, #tpu.memory_space<vmem>>, %arg6: memref<1x1x128xf32, #tpu.memory_space<vmem>>) attributes {dimension_semantics = [#tpu.dimension_semantics<parallel>, #tpu.dimension_semantics<arbitrary>], iteration_bounds = array<i64: 2, 3>, scalar_prefetch = 2 : i64, scratch_operands = 0 : i64, tpu.core_type = #tpu.core_type<tc>, window_params = [{transform_indices = @transform_0, window_bounds = array<i64: 256, 128>}, {transform_indices = @transform_1, window_bounds = array<i64: 128, 128>}, {transform_indices = @transform_2, window_bounds = array<i64: 1, 1, 128>}]} {
    %c0_i32 = arith.constant 0 : i32
    %0 = arith.cmpi eq, %arg1, %c0_i32 : i32
    %1 = arith.extui %0 : i1 to i32
    %c0_i32_0 = arith.constant 0 : i32
    %2 = arith.cmpi ne, %1, %c0_i32_0 : i32
    scf.if %2 {
      %cst_12 = arith.constant 0.000000e+00 : f32
      %27 = vector.broadcast %cst_12 : f32 to vector<1x1x128xf32>
      %c0_13 = arith.constant 0 : index
      %c0_14 = arith.constant 0 : index
      %c0_15 = arith.constant 0 : index
      %28 = vector.load %arg6[%c0_13, %c0_14, %c0_15] : memref<1x1x128xf32, #tpu.memory_space<vmem>>, vector<1x1x128xf32>
      tpu.vector_store %arg6[%c0_13, %c0_14, %c0_15], %27 {strides = array<i32>} : memref<1x1x128xf32, #tpu.memory_space<vmem>>, vector<1x1x128xf32>,
    } else {
    }
    %3 = arith.index_cast %arg1 : i32 to index
    %4 = memref.load %arg2[%3] : memref<3xi32, #tpu.memory_space<smem>>
    %5 = arith.index_cast %arg1 : i32 to index
    %6 = memref.load %arg3[%5] : memref<3xi32, #tpu.memory_space<smem>>
    %c128_i32 = arith.constant 128 : i32
    %7 = arith.muli %6, %c128_i32 : i32
    %8 = tpu.assume_multiple %7, 128 : i32
    %c128_i32_1 = arith.constant 128 : i32
    %9 = arith.muli %4, %c128_i32_1 : i32
    %10 = tpu.assume_multiple %9, 128 : i32
    %11 = arith.index_cast %8 : i32 to index
    %c0 = arith.constant 0 : index
    %12 = vector.load %arg4[%11, %c0] : memref<256x128xbf16, #tpu.memory_space<vmem>>, vector<128x128xbf16>
    %13 = arith.index_cast %10 : i32 to index
    %c0_2 = arith.constant 0 : index
    %14 = vector.load %arg4[%13, %c0_2] : memref<256x128xbf16, #tpu.memory_space<vmem>>, vector<128x128xbf16>
    %c0_3 = arith.constant 0 : index
    %c0_4 = arith.constant 0 : index
    %15 = vector.load %arg5[%c0_3, %c0_4] : memref<128x128xbf16, #tpu.memory_space<vmem>>, vector<128x128xbf16>
    %cst = arith.constant dense<0.000000e+00> : vector<128x128xf32>
    %16 = tpu.matmul %15, %12, %cst {dimension_numbers = #tpu.dot_dimension_numbers<[1], [0], [0], [1], [0, 0, 1, 1], [], []>} : vector<128x128xbf16>, vector<128x128xbf16>, vector<128x128xf32> -> vector<128x128xf32>
    %c0_5 = arith.constant 0 : index
    %c0_6 = arith.constant 0 : index
    %c0_7 = arith.constant 0 : index
    %17 = vector.load %arg6[%c0_5, %c0_6, %c0_7] : memref<1x1x128xf32, #tpu.memory_space<vmem>>, vector<1x1x128xf32>
    %18 = vector.shape_cast %17 : vector<1x1x128xf32> to vector<1x128xf32>
    %19 = arith.extf %14 : vector<128x128xbf16> to vector<128x128xf32>
    %20 = arith.mulf %16, %19 : vector<128x128xf32>
    %cst_8 = arith.constant dense<0.000000e+00> : vector<128xf32>
    %21 = vector.multi_reduction <add>, %20, %cst_8 [0] : vector<128x128xf32> to vector<128xf32>
    %22 = vector.shape_cast %21 : vector<128xf32> to vector<1x128xf32>
    %23 = arith.addf %18, %22 : vector<1x128xf32>
    %c0_9 = arith.constant 0 : index
    %c0_10 = arith.constant 0 : index
    %c0_11 = arith.constant 0 : index
    %24 = vector.load %arg6[%c0_9, %c0_10, %c0_11] : memref<1x1x128xf32, #tpu.memory_space<vmem>>, vector<1x1x128xf32>
    %25 = vector.shape_cast %24 : vector<1x1x128xf32> to vector<1x128xf32>
    %26 = vector.shape_cast %23 : vector<1x128xf32> to vector<1x1x128xf32>
    tpu.vector_store %arg6[%c0_9, %c0_10, %c0_11], %26 {strides = array<i32>} : memref<1x1x128xf32, #tpu.memory_space<vmem>>, vector<1x1x128xf32>,
    return
  }
  func.func @transform_0(%arg0: i32, %arg1: i32, %arg2: memref<3xi32, #tpu.memory_space<smem>>, %arg3: memref<3xi32, #tpu.memory_space<smem>>) -> (i32, i32) {
    %c0_i32 = arith.constant 0 : i32
    %c0_i32_0 = arith.constant 0 : i32
    return %c0_i32, %arg0 : i32, i32
  }
  func.func @transform_1(%arg0: i32, %arg1: i32, %arg2: memref<3xi32, #tpu.memory_space<smem>>, %arg3: memref<3xi32, #tpu.memory_space<smem>>) -> (i32, i32) {
    %0 = arith.index_cast %arg1 : i32 to index
    %1 = memref.load %arg2[%0] : memref<3xi32, #tpu.memory_space<smem>>
    %2 = arith.index_cast %arg1 : i32 to index
    %3 = memref.load %arg3[%2] : memref<3xi32, #tpu.memory_space<smem>>
    %c0_i32 = arith.constant 0 : i32
    return %1, %3 : i32, i32
  }
  func.func @transform_2(%arg0: i32, %arg1: i32, %arg2: memref<3xi32, #tpu.memory_space<smem>>, %arg3: memref<3xi32, #tpu.memory_space<smem>>) -> (i32, i32, i32) {
    %c0_i32 = arith.constant 0 : i32
    %c0_i32_0 = arith.constant 0 : i32
    %c0_i32_1 = arith.constant 0 : i32
    return %arg0, %c0_i32, %c0_i32_0 : i32, i32, i32
  }
}

</mosaic_0001>

<bundles_post_ra>
// kernel: tpu_custom_call.1
= control target key start
LH: loop header
LB: loop body
LE: loop exit
PB: predicated region body
PF: predicated region fallthrough
CT: control target
= control target key end

     0   :  { %s1585_s0 = inlined_call_operand.hbm [shape: s32[3], index: 0, kind: input, shape index: {}]   ;;  %s1586_s2 = inlined_call_operand.hbm [shape: bf16[256,256], index: 2, kind: input, shape index: {}]   ;;  %s1587_s3 = inlined_call_operand.hbm [shape: bf16[256,256], index: 3, kind: input, shape index: {}]   ;;  %s1588_s4 = inlined_call_operand.hbm [shape: f32[2,1,128], index: 4, kind: output, shape index: {}]   ;;  %s1589_s1 = inlined_call_operand.vmem [shape: s32[3], index: 1, kind: input, shape index: {}]  }
   0x1   :  { %1603 = sst [smem:[#allocation26_spill]] %s1586_s2  ;;  %s947_s17 = scalar_lea.hbm %s1585_s0, 16 }
   0x2   :  { %p948_p0 = scmp.ne.s32.totalorder %s1585_s0, %s947_s17  ;;  %p951_p1 = scmp.lt.u32.totalorder %s947_s17, %s1585_s0 }
   0x4   :  { %p953_p2 = pnand %p951_p1, %p948_p0 }
   0x6   :  { %956 = shalt.err (!%p953_p2)  }
   0x7   :  { %s1159_s22 = smov [#allocation3]   ;;  %s11_s27 = sshll.u32 %s1589_s1, 4  ;;  %s12_s27 = int_to_ptr.vmem [resolvable:$true] %s11_s27 }
   0x8   :  { %10 = dma.hbm_to_smem %s1585_s0, 16, %s1159_s22, [#allocation2] }
   0x9   :  { %s957_s28 = scalar_lea.vmem %s12_s27, 16  ;;  %p962_p4 = scmp.lt.s32.totalorder %s12_s27, %s12_s27 }
   0xa   :  { %p958_p3 = scmp.ne.s32.totalorder %s12_s27, %s957_s28  ;;  %p963_p5 = scmp.lt.s32.totalorder %s957_s28, %s957_s28 }
   0xc   :  { %p964_p6 = por %p963_p5, %p962_p4 }
   0xe   :  { %p965_p7 = pnand %p964_p6, %p958_p3 }
  0x10   :  { %968 = shalt.err (!%p965_p7)  }
  0x11   :  { %s1160_s29 = smov [#allocation4]  }
  0x12   :  { %14 = dma.vmem_to_smem %s12_s27, 16, %s1160_s29, [#allocation2] }
  0x13   :  { %1101 = dma.done.wait [#allocation2], 32 }
  0x14   :  { %1102 = vsyncadd [#allocation2], 4294967264 }
  0x15   :  { %16 = sfence }
  0x16   :  { %17 = vsyncpa [#allocation6], 0 }
  0x17   :  { %19 = vsyncpa [#allocation6 + $0x1], 0 }
  0x18   :  { %20 = vsyncpa [#allocation9], 0 }
  0x19   :  { %22 = vsyncpa [#allocation9 + $0x1], 0 }
  0x1a   :  { %23 = vsyncpa [#allocation7], 0 }
  0x1b   :  { %25 = vsyncpa [#allocation7 + $0x1], 0  ;;  %s1208_s0 = smov 0   ;;  %s1210_s1 = smov 0  }
  0x1c   :  { %s1212_s30 = smov 0   ;;  %s1214_s5 = smov 0  }
  0x1d   :  { %s1216_s6 = smov 0   ;;  %s1218_s7 = smov 0  }
  0x1e   :  { %s1220_s8 = smov 0   ;;  %s1222_s9 = smov 0  }
  0x1f   :  { %s1224_s10 = smov 0   ;;  %s1226_s11 = smov 0  }
  0x20   :  { %s1228_s12 = smov 0  }
  0x21 LB: > { %1604 = sst [smem:[#allocation19_spill]] %s1137_s7  ;;  %s669_s13 = sadd.s32 4294967295, %s1157_s12   ;;  %s1157_s12 = sphi %s1228_s12, %s31_s12   ;;  %s1153_s11 = sphi %s1226_s11, %s1640_s11   ;;  %s1149_s10 = sphi %s1224_s10, %s1639_s10   ;;  %s1145_s9 = sphi %s1222_s9, %s1638_s9   ;;  %s1141_s8 = sphi %s1220_s8, %s1637_s8   ;;  %s1137_s7 = sphi %s1218_s7, %s1636_s7   ;;  %s1133_s6 = sphi %s1216_s6, %s1645_s6   ;;  %s1129_s5 = sphi %s1214_s5, %s1644_s5   ;;  %s1125_s30 = sphi %s1212_s30, %s1643_s30   ;;  %s1121_s1 = sphi %s1210_s1, %s1642_s1   ;;  %s1117_s0 = sphi %s1208_s0, %s1641_s0  }
  0x22   : > { %1605 = sst [smem:[#allocation20_spill]] %s1149_s10  ;;  %s670_s14 = sadd.s32 4294967294, %s1157_s12  }
  0x23   : > { %1606 = sst [smem:[#allocation21_spill]] %s1153_s11  ;;  %s40_s15 = sadd.s32 1, %s1149_s10 }
  0x24   : > { %s43_s16 = sadd.s32 1, %s1153_s11  ;;  %p41_p8 = scmp.ge.s32.totalorder %s40_s15, 3 }
  0x25   : > { %s50_s17 = sadd.s32 1, %s1137_s7  ;;  %p57_p9 = scmp.ne.s32.totalorder %s1137_s7, %s1133_s6 }
  0x26   : > { %p1594_p10 = scmp.eq.s32.totalorder %s1157_s12, 0  ;;  %s1647_s15 = smov (%p41_p8, %s40_s15), 0 }
  0x27   : > { %1607 = sst [smem:[#allocation22_spill]] %s1647_s15  ;;  %s1649_s16 = smov (!%p41_p8, %s43_s16), %s1153_s11 }
  0x28   : > { %p1279_p11 = por %p1594_p10, %p57_p9  ;;  %p63_p12 = scmp.ne.s32.totalorder %s1133_s6, %s1129_s5 }
  0x29   : > { %p45_p13 = scmp.ge.s32.totalorder %s1649_s16, 2  ;;  %p1285_p0 = scmp.eq.s32.totalorder %s669_s13, 0 }
  0x2a   : > { %s1290_s20 = sld [smem:[#allocation3 + %s1647_s15]]  ;;  %p119_p2 = scmp.eq.s32.totalorder %s669_s13, 5 }
  0x2b   : > { %s1293_s21 = sld [smem:[#allocation4 + %s1647_s15]]  ;;  %s1651_s16 = smov (%p45_p13, %s1649_s16), 0 }
  0x2c   : > { %1610 = sst [smem:[#allocation23_spill]] %s1651_s16  ;;  %p1299_p1 = por %p1285_p0, %p63_p12 }
  0x2d   : > { %s47_s23 = ssub.s32 %s1153_s11, %s1651_s16  ;;  %p125_p3 = scmp.eq.s32.totalorder %s670_s14, 5 }
  0x2e   : > { %s1611_s22 = scalar_select %p1299_p1, 1, 0 }
  0x2f   : > { %p48_p4 = scmp.eq.s32.totalorder %s47_s23, 0  ;;  %p1308_p5 = por %p119_p2, %p57_p9 }
  0x30   : > { %p1312_p6 = por %p125_p3, %p63_p12  ;;  %p1593_p7 = scmp.lt.s32.totalorder %s1157_s12, 6 }
  0x31   : > { %s1612_s24 = scalar_select %p1308_p5, 1, 0 }
  0x32   : > { %s1613_s25 = scalar_select %p1312_p6, 1, 0 }
  0x33   : > { %s1317_s26 = scalar_select %p48_p4, %s1137_s7, %s50_s17  }
  0x34   : > { %s145_s27 = sand.u32 1, %s1137_s7   ;;  %s674_s29 = sshll.u32 %s1153_s11, 6 }
  0x35   : > { %1614 = sst [smem:[#allocation24_spill]] %s1317_s26  ;;  %s673_s28 = sshll.u32 %s145_s27, 7 }
  0x36   : > { %s1615_s2 = sld [smem:[#allocation26_spill]]  ;;  %s149_s23 = scalar_lea.vmem [#allocation5], %s673_s28 }
  0x37   : > { %s155_s16 = sshll.u32 %s149_s23, 4  ;;  %p1333_p8 = pnand %p1593_p7, %p1279_p11  ;;  %s1327_s16 = int_to_ptr.vmem [resolvable:$true] %s155_s16 }
  0x38   : > { %s1337_s11 = scalar_lea.sflag [#allocation6], %s145_s27 }
  0x39   : > { %p971_p12 = pneg %p1333_p8 }
  0x3c   : > { %s1325_s14 = scalar_lea.hbm %s1615_s2, %s674_s29  ;;  %s974_s18 = scalar_lea.hbm %s1615_s2, 4096 }
  0x3d   : > { %s969_s15 = scalar_lea.hbm %s1325_s14, 2048  ;;  %p975_p11 = scmp.lt.u32.totalorder %s1325_s14, %s1615_s2 }
  0x3e   : > { %p970_p9 = scmp.ne.s32.totalorder %s1325_s14, %s969_s15  ;;  %p976_p3 = scmp.lt.u32.totalorder %s974_s18, %s969_s15 }
  0x3f   : > { %p978_p7 = scmp.lt.u32.totalorder %s969_s15, %s1325_s14 }
  0x40   : > { %p972_p13 = pnand %p971_p12, %p970_p9  ;;  %p977_p4 = por %p976_p3, %p975_p11 }
  0x42   : > { %p973_p2 = pneg %p972_p13  ;;  %p979_p10 = por %p978_p7, %p977_p4 }
  0x44   : > { %p980_p6 = pnand %p979_p10, %p973_p2 }
  0x46   : > { %983 = shalt.err (!%p980_p6)
}
  0x47   : > { %s984_s27 = scalar_lea.vmem %s1327_s16, 2048  ;;  %s1161_s28 = smov [#allocation5]  }
  0x48   : > { %p985_p9 = scmp.ne.s32.totalorder %s1327_s16, %s984_s27  ;;  %s989_s29 = sshll.u32 %s1161_s28, 4  ;;  %s990_s29 = int_to_ptr.vmem [resolvable:$false] %s989_s29 }
  0x49   : > { %s991_s13 = scalar_lea.vmem %s990_s29, 4096  ;;  %p992_p1 = scmp.lt.s32.totalorder %s1327_s16, %s990_s29 }
  0x4a   : > { %p987_p13 = pnand %p985_p9, %p971_p12  ;;  %p993_p11 = scmp.lt.s32.totalorder %s991_s13, %s984_s27 }
  0x4c   : > { %p988_p5 = pneg %p987_p13  ;;  %p994_p3 = por %p993_p11, %p992_p1 }
  0x4e   : > { %p995_p7 = pnand %p994_p3, %p988_p5 }
  0x50   : > { %998 = shalt.err (!%p995_p7)
}
  0x51   : > { %s1597_s15 = smov 128   ;;  %s1598_s18 = smov 64  }
  0x52   : > { %s1599_s23 = smov 4   ;;  %p679_p10 = scmp.ge.s32.totalorder %s1157_s12, 1 }
  0x53   : > { %823 = dma.hbm_to_vmem [thread:$0]  (!%p1333_p8), %s1325_s14, 2048, %s1327_s16, %s1337_s11, %s1597_s15, %s1598_s18, %s1599_s23  }
  0x54   : > { %p188_p1 = scmp.lt.s32.totalorder %s1157_s12, 7  ;;  %s73_s28 = sld [smem:[#allocation3 + %s1149_s10]] }
  0x55   : > { %s74_s29 = sld [smem:[#allocation4 + %s1149_s10]]  ;;  %p89_p6 = scmp.ne.s32.totalorder %s1125_s30, %s1121_s1 }
  0x56   : > { %p1370_p5 = pnand %p679_p10, %p188_p1  ;;  %p95_p12 = scmp.ne.s32.totalorder %s1121_s1, %s1117_s0 }
  0x57   : > { %s165_s11 = sand.u32 1, %s1125_s30   ;;  %p1619_p8 = scmp.eq.s32.totalorder %s1157_s12, 0 }
  0x58   : > { %p1382_p2 = por %p95_p12, %p1285_p0  ;;  %s82_s15 = sadd.s32 1, %s1125_s30 }
  0x59   : > { %p1390_p4 = por %p89_p6, %p1619_p8  ;;  %s675_s19 = sshll.u32 %s165_s11, 6 }
  0x5a   : > { %s1618_s17 = scalar_select %p1382_p2, 1, 0 }
  0x5b   : > { %s77_s16 = ssub.s32 %s73_s28, %s1290_s20  ;;  %s78_s13 = ssub.s32 %s74_s29, %s1293_s21 }
  0x5c   : > { %s79_s0 = sor.u32 %s78_s13, %s77_s16  ;;  %p1621_p9 = scmp.lt.s32.totalorder %s1157_s12, 6 }
  0x5d   : > { %p80_p0 = scmp.eq.s32.totalorder %s79_s0, 0  ;;  %s169_s0 = scalar_lea.vmem [#allocation8], %s675_s19 }
  0x5e   : > { %p1400_p13 = pnand %p1621_p9, %p1390_p4  ;;  %p1624_p11 = pmov %p1621_p9 }
  0x5f   : > { %s811_s20 = scalar_select %p1390_p4, [#allocation3], [#allocation11] }
  0x60   : > { %s1407_s28 = scalar_select %p80_p0, %s1125_s30, %s82_s15  }
  0x61   : > { %s812_s23 = scalar_select %p1390_p4, %s1149_s10, 0 }
  0x62   : > { %1623 = sst [smem:[#allocation25_spill]] %s1407_s28  ;;  %s1653_s20 = smov (!%p1624_p11, %s811_s20), [#allocation13] }
  0x63   : > { %p1625_p3 = pmov %p1621_p9  ;;  %s180_s2 = sshll.u32 %s169_s0, 4  ;;  %s1420_s2 = int_to_ptr.vmem [resolvable:$true] %s180_s2 }
  0x64   : > { %s813_s21 = scalar_select %p1390_p4, [#allocation4], [#allocation12] }
  0x65   : > { %s1655_s23 = smov (!%p1625_p3, %s812_s23), 0  ;;  %p1626_p7 = pmov %p1625_p3 }
  0x66   : > { %s170_s29 = sld [smem:[%s1653_s20 + %s1655_s23]]  ;;  %s1427_s14 = scalar_lea.sflag [#allocation9], %s165_s11 }
  0x67   : > { %s1657_s21 = smov (!%p1626_p7, %s813_s21), [#allocation14]  ;;  %p1001_p1 = pneg %p1400_p13 }
  0x68   : > { %s171_s16 = sld [smem:[%s1657_s21 + %s1655_s23]]  ;;  %s1004_s7 = scalar_lea.hbm %s1587_s3, 4096 }
  0x6c   : > { %s706_s13 = sshll.u32 %s170_s29, 5 }
  0x6e   : > { %s177_s26 = sadd.s32 %s706_s13, %s171_s16 }
  0x6f   : > { %s678_s15 = sshll.u32 %s177_s26, 6 }
  0x70   : > { %s1425_s28 = scalar_lea.hbm %s1587_s3, %s678_s15 }
  0x71   : > { %s999_s20 = scalar_lea.hbm %s1425_s28, 1024  ;;  %p1005_p8 = scmp.lt.u32.totalorder %s1425_s28, %s1587_s3 }
  0x72   : > { %p1000_p10 = scmp.ne.s32.totalorder %s1425_s28, %s999_s20  ;;  %p1006_p4 = scmp.lt.u32.totalorder %s1004_s7, %s999_s20 }
  0x73   : > { %p1008_p9 = scmp.lt.u32.totalorder %s999_s20, %s1425_s28 }
  0x74   : > { %p1002_p6 = pnand %p1001_p1, %p1000_p10  ;;  %p1007_p0 = por %p1006_p4, %p1005_p8 }
  0x76   : > { %p1003_p12 = pneg %p1002_p6  ;;  %p1009_p11 = por %p1008_p9, %p1007_p0 }
  0x78   : > { %p1010_p3 = pnand %p1009_p11, %p1003_p12 }
  0x7a   : > { %1013 = shalt.err (!%p1010_p3)
}
  0x7b   : > { %s1014_s11 = scalar_lea.vmem %s1420_s2, 1024  ;;  %s1165_s21 = smov [#allocation8]  }
  0x7c   : > { %p1015_p7 = scmp.ne.s32.totalorder %s1420_s2, %s1014_s11  ;;  %s1019_s29 = sshll.u32 %s1165_s21, 4  ;;  %s1020_s29 = int_to_ptr.vmem [resolvable:$false] %s1019_s29 }
  0x7d   : > { %s1021_s16 = scalar_lea.vmem %s1020_s29, 2048  ;;  %p1022_p2 = scmp.lt.s32.totalorder %s1420_s2, %s1020_s29 }
  0x7e   : > { %p1017_p10 = pnand %p1015_p7, %p1001_p1  ;;  %p1023_p8 = scmp.lt.s32.totalorder %s1021_s16, %s1014_s11 }
  0x80   : > { %p1018_p6 = pneg %p1017_p10  ;;  %p1024_p4 = por %p1023_p8, %p1022_p2 }
  0x82   : > { %p1025_p0 = pnand %p1024_p4, %p1018_p6 }
  0x84   : > { %1028 = shalt.err (!%p1025_p0)
}
  0x85   : > { %s1627_s13 = smov 4   ;;  %s1628_s0 = smov 64  }
  0x86   : > { %s1629_s15 = smov 128   ;;  %192 = sbr.rel (%p1370_p5) target bundleno = 473 (0x1d9), region = 28 }
  0x87   : > { %830 = dma.hbm_to_vmem [thread:$0]  (!%p1400_p13), %s1425_s28, 1024, %s1420_s2, %s1427_s14, %s1629_s15, %s1628_s0, %s1627_s13  }
  0x88   : > { %s1461_s20 = sand.u32 (!%p1370_p5), 1, %s1133_s6   ;;  %p1630_p2 = scmp.ne.s32.totalorder (!%p1370_p5), %s1611_s22, 0 }
  0x89   : > { %s680_s26 = sshll.u32 (!%p1370_p5), %s1461_s20, 7  ;;  %s195_s23 = scalar_lea.sflag (!%p1370_p5), [#allocation6], %s1461_s20 }
  0x8a   : > { %s1465_s7 = scalar_lea.vmem (!%p1370_p5), [#allocation5], %s680_s26 }
  0x8d   : > { %1104 = dma.done.wait (%p1630_p2), %s195_s23, 2048  }
  0x8e   : > { %1106 = vsyncadd (%p1630_p2), %s195_s23, 4294965248  ;;  %s203_s2 = sand.u32 1, %s1121_s1   ;;  %p1631_p5 = scmp.ne.s32.totalorder %s1618_s17, 0 }
  0x8f   : > { %s681_s18 = sshll.u32 %s203_s2, 6  ;;  %s204_s27 = scalar_lea.sflag [#allocation9], %s203_s2 }
  0x90   : > { %s1472_s28 = scalar_lea.vmem [#allocation8], %s681_s18 }
  0x91   : > { %1108 = dma.done.wait (%p1631_p5), %s204_s27, 1024  }
  0x92   : > { %1110 = vsyncadd (%p1631_p5), %s204_s27, 4294966272  ;;  %s1479_s14 = scalar_lea.vmem [#allocation10], %s1461_s20  ;;  %p682_p13 = scmp.ne.s32.totalorder %s1141_s8, 0 }
  0x93   : > { %v1166_v0 = vmov (!%p682_p13), 0.0  }
  0x94   : > { %239 = sbr.rel (%p682_p13) target bundleno = 155 (0x9b), region = 40  ;;  %240 = vst [vmem:[%s1479_s14] sm:$0x1] (!%p682_p13), %v1166_v0 }
  0x9b PF: > { %s242_s22 = sld [smem:[#allocation4 + %s1141_s8]]  ;;  %v939_v1 = vld [vmem:[%s1472_s28] sm:$0xff]   ;;  %v940_v11 = vld [vmem:[%s1472_s28 + $0x8] sm:$0xff]   ;;  %v941_v13 = vld [vmem:[%s1472_s28 + $0x10] sm:$0xff]   ;;  %s563_s15 = sshll.u32 %s1479_s14, 4  ;;  %s1523_s15 = int_to_ptr.vmem [resolvable:$true] %s563_s15 }
  0x9c   : > { %778 = vmatprep.mubr.bf16.mxu0 %v939_v1  ;;  %v943_v2 = vld [vmem:[%s1472_s28 + $0x20] sm:$0xff]   ;;  %v944_v12 = vld [vmem:[%s1472_s28 + $0x28] sm:$0xff]   ;;  %v945_v14 = vld [vmem:[%s1472_s28 + $0x30] sm:$0xff]   ;;  %s241_s21 = sld [smem:[#allocation3 + %s1141_s8]]  ;;  %s703_s8 = sshll.u32 %s1145_s9, 4 }
  0x9d   : > { %786 = vmatprep.mubr.bf16.mxu1 %v943_v2  ;;  %v942_v15 = vld [vmem:[%s1472_s28 + $0x18] sm:$0xff]   ;;  %s551_s2 = scalar_lea.sflag [#allocation7], %s1461_s20  ;;  %s1029_s18 = scalar_lea.vmem %s1523_s15, 16 }
  0x9e   : > { %v946_v16 = vld [vmem:[%s1472_s28 + $0x38] sm:$0xff]   ;;  %p1030_p1 = scmp.ne.s32.totalorder %s1523_s15, %s1029_s18  ;;  %p1632_p12 = scmp.ne.s32.totalorder %s1612_s24, 0 }
  0x9f   : > { %s1167_s9 = smov [#allocation10]  }
  0xa0   : > { %p1031_p9 = pnand %p1030_p1, %p1632_p12  ;;  %s1033_s27 = sshll.u32 %s1167_s9, 4  ;;  %s1034_s27 = int_to_ptr.vmem [resolvable:$false] %s1033_s27 }
  0xa1   : > { %s683_s17 = sshll.u32 %s242_s22, 7  ;;  %s1035_s28 = scalar_lea.vmem %s1034_s27, 32 }
  0xa2   : > { %s245_s10 = sshra.s32 %s683_s17, 3  ;;  %s684_s29 = sshll.u32 %s241_s21, 7 }
  0xa3   : > { %s685_s19 = sshll.u32 %s245_s10, 2  ;;  %s265_s16 = sshra.s32 %s684_s29, 3 }
  0xa4   : > { %s1487_s11 = scalar_lea.vmem %s1465_s7, %s685_s19 [#allocation5]  ;;  %s686_s13 = sshll.u32 %s265_s16, 2 }
  0xa5   : > { %v931_v3 = vld [vmem:[%s1487_s11] sm:$0xff]   ;;  %v932_v4 = vld [vmem:[%s1487_s11 + $0x8] sm:$0xff]   ;;  %v933_v5 = vld [vmem:[%s1487_s11 + $0x10] sm:$0xff]   ;;  %s1505_s0 = scalar_lea.vmem %s1465_s7, %s686_s13 [#allocation5]  ;;  %s1521_s7 = scalar_lea.hbm %s1588_s4, %s703_s8 }
  0xa6   : > { %762 = vmatprep.subr.bf16.mxu0 %v931_v3  ;;  %794 = vmatprep.subr.bf16.mxu1 %v931_v3  ;;  %v934_v6 = vld [vmem:[%s1487_s11 + $0x18] sm:$0xff]   ;;  %v935_v7 = vld [vmem:[%s1487_s11 + $0x20] sm:$0xff]   ;;  %v936_v8 = vld [vmem:[%s1487_s11 + $0x28] sm:$0xff]   ;;  %p1032_p11 = pneg %p1031_p9  ;;  %p1036_p3 = scmp.lt.s32.totalorder %s1523_s15, %s1034_s27 }
  0xa7   : > { %763 = vmatpush3.bf16.msra.mxu0 %v931_v3  ;;  %802 = vmatpush3.bf16.msra.mxu1 %v931_v3  ;;  %v937_v9 = vld [vmem:[%s1487_s11 + $0x30] sm:$0xff]   ;;  %v938_v10 = vld [vmem:[%s1487_s11 + $0x38] sm:$0xff]   ;;  %v708_v17 = vld [vmem:[%s1505_s0] sm:$0xff]   ;;  %p1037_p7 = scmp.lt.s32.totalorder %s1035_s28, %s1029_s18 }
  0xa8   : > { %764 = vmatprep.subr.bf16.mxu0 %v932_v4  ;;  %795 = vmatprep.subr.bf16.mxu1 %v932_v4  ;;  %v739_v18 = vld [vmem:[%s1505_s0 + $0x8] sm:$0xff]   ;;  %v709_v20 = vunpack.c.l.bf16 %v708_v17  ;;  %v710_v21 = vunpack.c.h.bf16 %v708_v17  ;;  %v740_v29 = vld [vmem:[%s1505_s0 + $0x10] sm:$0xff]   ;;  %v741_v37 = vld [vmem:[%s1505_s0 + $0x18] sm:$0xff]  }
  0xa9   : > { %v713_v25 = vunpack.c.l.bf16 %v739_v18  ;;  %v714_v32 = vunpack.c.h.bf16 %v739_v18  ;;  %v717_v36 = vunpack.c.l.bf16 %v740_v29  ;;  %v718_v41 = vunpack.c.h.bf16 %v740_v29  ;;  %v742_v44 = vld [vmem:[%s1505_s0 + $0x20] sm:$0xff]   ;;  %v743_v59 = vld [vmem:[%s1505_s0 + $0x28] sm:$0xff]   ;;  %v744_v0 = vld [vmem:[%s1505_s0 + $0x30] sm:$0xff]   ;;  %p1038_p10 = por %p1037_p7, %p1036_p3 }
  0xaa   : > { %v721_v46 = vunpack.c.l.bf16 %v741_v37  ;;  %v722_v54 = vunpack.c.h.bf16 %v741_v37  ;;  %v725_v56 = vunpack.c.l.bf16 %v742_v44  ;;  %v726_v63 = vunpack.c.h.bf16 %v742_v44  ;;  %v494_v29 = vld [vmem:[%s1479_s14] sm:$0x1] }
  0xab   : > { %765 = vmatpush3.bf16.msra.mxu0 %v932_v4  ;;  %803 = vmatpush3.bf16.msra.mxu1 %v932_v4  ;;  %v729_v1 = vunpack.c.l.bf16 %v743_v59  ;;  %v730_v4 = vunpack.c.h.bf16 %v743_v59  ;;  %p1039_p6 = pnand %p1038_p10, %p1032_p11 }
  0xac   : > { %766 = vmatprep.subr.bf16.mxu0 %v933_v5  ;;  %796 = vmatprep.subr.bf16.mxu1 %v933_v5 }
  0xaf   : > { %767 = vmatpush3.bf16.msra.mxu0 %v933_v5  ;;  %804 = vmatpush3.bf16.msra.mxu1 %v933_v5 }
  0xb0   : > { %768 = vmatprep.subr.bf16.mxu0 %v934_v6  ;;  %797 = vmatprep.subr.bf16.mxu1 %v934_v6 }
  0xb3   : > { %769 = vmatpush3.bf16.msra.mxu0 %v934_v6  ;;  %805 = vmatpush3.bf16.msra.mxu1 %v934_v6  ;;  %v733_v6 = vunpack.c.l.bf16 %v744_v0 }
  0xb4   : > { %770 = vmatprep.subr.bf16.mxu0 %v935_v7  ;;  %798 = vmatprep.subr.bf16.mxu1 %v935_v7 }
  0xb7   : > { %771 = vmatpush3.bf16.msra.mxu0 %v935_v7  ;;  %806 = vmatpush3.bf16.msra.mxu1 %v935_v7 }
  0xb8   : > { %772 = vmatprep.subr.bf16.mxu0 %v936_v8  ;;  %799 = vmatprep.subr.bf16.mxu1 %v936_v8 }
  0xbb   : > { %773 = vmatpush3.bf16.msra.mxu0 %v936_v8  ;;  %807 = vmatpush3.bf16.msra.mxu1 %v936_v8 }
  0xbc   : > { %774 = vmatprep.subr.bf16.mxu0 %v937_v9  ;;  %800 = vmatprep.subr.bf16.mxu1 %v937_v9 }
  0xbf   : > { %775 = vmatpush3.bf16.msra.mxu0 %v937_v9  ;;  %808 = vmatpush3.bf16.msra.mxu1 %v937_v9  ;;  %v745_v9 = vld [vmem:[%s1505_s0 + $0x38] sm:$0xff]  }
  0xc0   : > { %776 = vmatprep.subr.bf16.mxu0 %v938_v10  ;;  %801 = vmatprep.subr.bf16.mxu1 %v938_v10  ;;  %v738_v17 = vunpack.c.h.bf16 %v745_v9 }
  0xc3   : > { %777 = vmatpush3.bf16.msra.mxu0 %v938_v10  ;;  %809 = vmatpush3.bf16.msra.mxu1 %v938_v10 }
  0xc6   : > { %779 = vmatmul.mubr.bf16.vlgmr.msra.gmra.mrb[0].mxu0 %v940_v11  ;;  %787 = vmatmul.mubr.bf16.vlgmr.msra.gmra.mrb[0].mxu1 %v944_v12 }
  0xc7   : > { %782 = vmatprep.mubr.bf16.mxu0 %v941_v13  ;;  %790 = vmatprep.mubr.bf16.mxu1 %v945_v14  ;;  %v734_v13 = vunpack.c.h.bf16 %v744_v0  ;;  %v737_v14 = vunpack.c.l.bf16 %v745_v9 }
  0xce   : > { %783 = vmatmul.mubr.bf16.gmra.mrb[4].mxu0 %v942_v15  ;;  %791 = vmatmul.mubr.bf16.gmra.mrb[4].mxu1 %v946_v16 }
 0x199   : > { %v780_v19 = vpop.f32.mrb[0].mxu0  ;;  %v788_v22 = vpop.f32.mrb[0].mxu1 }
 0x19a   : > { %v431_v23 = vpop.f32.mrb[1].mxu0  ;;  %v463_v24 = vpop.f32.mrb[1].mxu1  ;;  %v513_v34 = vmul.f32 %v780_v19, %v713_v25  ;;  %v521_v7 = vmul.f32 %v788_v22, %v729_v1 }
 0x19b   : > { %v781_v26 = vpop.f32.mrb[2].mxu0  ;;  %v789_v27 = vpop.f32.mrb[2].mxu1  ;;  %v511_v31 = vmul.f32 %v709_v20, %v431_v23  ;;  %v519_v62 = vmul.f32 %v725_v56, %v463_v24 }
 0x19c   : > { %v434_v28 = vpop.f32.mrb[3].mxu0  ;;  %v466_v30 = vpop.f32.mrb[3].mxu1  ;;  %v514_v38 = vmul.f32 %v781_v26, %v714_v32  ;;  %v522_v10 = vmul.f32 %v789_v27, %v730_v4 }
 0x19d   : > { %v512_v33 = vmul.f32 %v710_v21, %v434_v28  ;;  %v520_v5 = vmul.f32 %v726_v63, %v466_v30 }
 0x19f   : > { %v527_v35 = vadd.f32 %v512_v33, %v511_v31 }
 0x1a1   : > { %v528_v39 = vadd.f32 %v527_v35, %v513_v34  ;;  %v784_v40 = vpop.f32.mrb[4].mxu0  ;;  %v792_v42 = vpop.f32.mrb[4].mxu1 }
 0x1a2   : > { %v447_v43 = vpop.f32.mrb[5].mxu0  ;;  %v479_v45 = vpop.f32.mrb[5].mxu1  ;;  %v517_v57 = vmul.f32 %v784_v40, %v721_v46  ;;  %v525_v19 = vmul.f32 %v792_v42, %v737_v14 }
 0x1a3   : > { %v515_v47 = vmul.f32 %v717_v36, %v447_v43  ;;  %v529_v48 = vadd.f32 %v528_v39, %v514_v38  ;;  %v785_v49 = vpop.f32.mrb[6].mxu0  ;;  %v793_v50 = vpop.f32.mrb[6].mxu1  ;;  %v523_v12 = vmul.f32 %v733_v6, %v479_v45 }
 0x1a4   : > { %v450_v51 = vpop.f32.mrb[7].mxu0  ;;  %v482_v52 = vpop.f32.mrb[7].mxu1  ;;  %v518_v60 = vmul.f32 %v785_v49, %v722_v54  ;;  %v526_v21 = vmul.f32 %v793_v50, %v738_v17 }
 0x1a5   : > { %v530_v53 = vadd.f32 %v529_v48, %v515_v47  ;;  %v516_v55 = vmul.f32 %v718_v41, %v450_v51  ;;  %v524_v18 = vmul.f32 %v734_v13, %v482_v52 }
 0x1a7   : > { %v531_v58 = vadd.f32 %v530_v53, %v516_v55 }
 0x1a9   : > { %v532_v61 = vadd.f32 %v531_v58, %v517_v57 }
 0x1ab   : > { %v533_v2 = vadd.f32 %v532_v61, %v518_v60 }
 0x1ad   : > { %v534_v3 = vadd.f32 %v533_v2, %v519_v62 }
 0x1af   : > { %v535_v8 = vadd.f32 %v534_v3, %v520_v5 }
 0x1b1   : > { %v536_v11 = vadd.f32 %v535_v8, %v521_v7 }
 0x1b3   : > { %v537_v15 = vadd.f32 %v536_v11, %v522_v10 }
 0x1b5   : > { %v538_v16 = vadd.f32 %v537_v15, %v523_v12 }
 0x1b7   : > { %v539_v20 = vadd.f32 %v538_v16, %v524_v18 }
 0x1b9   : > { %v540_v22 = vadd.f32 %v539_v20, %v525_v19 }
 0x1bb   : > { %v541_v23 = vadd.f32 %v540_v22, %v526_v21 }
 0x1bd   : > { %v542_v24 = vrot.slane %v541_v23, 4 }
 0x1bf   : > { %v543_v25 = vadd.f32 %v542_v24, %v541_v23 }
 0x1c1   : > { %v544_v26 = vrot.slane %v543_v25, 2 }
 0x1c3   : > { %v545_v27 = vadd.f32 %v544_v26, %v543_v25 }
 0x1c5   : > { %v546_v28 = vrot.slane %v545_v27, 1 }
 0x1c7   : > { %v547_v30 = vadd.f32 %v546_v28, %v545_v27 }
 0x1c9   : > { %v548_v31 = vadd.f32 %v547_v30, %v494_v29 }
 0x1cb   : > { %549 = vst [vmem:[%s1479_s14] sm:$0x1] %v548_v31 }
 0x1cc   : > { %1042 = shalt.err (!%p1039_p6)
}
 0x1cd   : > { %s1043_s20 = scalar_lea.hbm %s1521_s7, 16  ;;  %s1047_s17 = scalar_lea.hbm %s1588_s4, 32 }
 0x1ce   : > { %p1044_p8 = scmp.ne.s32.totalorder %s1521_s7, %s1043_s20  ;;  %p1048_p2 = scmp.lt.u32.totalorder %s1521_s7, %s1588_s4 }
 0x1cf   : > { %p1049_p5 = scmp.lt.u32.totalorder %s1047_s17, %s1043_s20  ;;  %p1051_p1 = scmp.lt.u32.totalorder %s1043_s20, %s1521_s7 }
 0x1d0   : > { %p1045_p4 = pnand %p1044_p8, %p1632_p12 }
 0x1d1   : > { %p1050_p13 = por %p1049_p5, %p1048_p2 }
 0x1d2   : > { %p1046_p0 = pneg %p1045_p4 }
 0x1d3   : > { %p1052_p9 = por %p1051_p1, %p1050_p13 }
 0x1d5   : > { %p1053_p11 = pnand %p1052_p9, %p1046_p0 }
 0x1d7   : > { %1056 = shalt.err (!%p1053_p11)
}
 0x1d8   : > { %818 = dma.vmem_to_hbm [thread:$0]  (%p1632_p12), %s1523_s15, 16, %s1521_s7, %s551_s2  }
 0x1d9 PF: > { %p836_p3 = scmp.ge.s32.totalorder %s1157_s12, 2  ;;  %s575_s11 = sand.u32 1, %s1129_s5  }
 0x1da   : > { %p1633_p7 = scmp.ne.s32.totalorder %s1613_s25, 0  ;;  %s576_s21 = scalar_lea.sflag [#allocation7], %s575_s11 }
 0x1dc   : > { %p832_p10 = pnand %p836_p3, %p1633_p7 }
 0x1de   : > { %1112 = dma.done.wait (!%p832_p10), %s576_s21, 16  }
 0x1df   : > { %1114 = vsyncadd (!%p832_p10), %s576_s21, 4294967280  ;;  %s31_s12 = sadd.s32 1, %s1157_s12   ;;  %s1634_s24 = sld [smem:[#allocation25_spill]] }
 0x1e0   : > { %p28_p6 = scmp.ge.s32.totalorder %s31_s12, 8   ;;  %s1635_s29 = sld [smem:[#allocation19_spill]] }
 0x1e1   : > { %s1636_s7 = sld [smem:[#allocation24_spill]]  ;;  %s1637_s8 = sld [smem:[#allocation20_spill]] }
 0x1e2   : > { %s1638_s9 = sld [smem:[#allocation21_spill]]  ;;  %s1639_s10 = sld [smem:[#allocation22_spill]] }
 0x1e3   : > { %s1640_s11 = sld [smem:[#allocation23_spill]]  ;;  %s1641_s0 = smov %s1121_s1 }
 0x1e4   : > { %s1642_s1 = smov %s1125_s30  ;;  %s1644_s5 = smov %s1133_s6 }
 0x1e5   : > { %s1643_s30 = smov %s1634_s24  ;;  %30 = sbr.rel (!%p28_p6) target bundleno = 33 (0x21), region = 92 }
 0x1e6   : > { %s1645_s6 = smov %s1635_s29 }
 0x1ec   :  { %580 = vsyncpa [#allocation6], 1 }
 0x1ed   :  { %582 = vsyncpa [#allocation6 + $0x1], 1 }
 0x1ee   :  { %583 = vsyncpa [#allocation9], 1 }
 0x1ef   :  { %585 = vsyncpa [#allocation9 + $0x1], 1 }
 0x1f0   :  { %586 = vsyncpa [#allocation7], 1 }
 0x1f1   :  { %588 = vsyncpa [#allocation7 + $0x1], 1 }

</bundles_post_ra>
